<compile_context>
chip_gen: v6e
topology: v6e:2x2x1
jax: 0.10.0
libtpu: 0.0.40
codegen_flags: <defaults>
</compile_context>

<pallas_src>
import functools

import jax
import jax.numpy as jnp
from jax.experimental import pallas as pl
from jax.experimental.pallas import tpu as pltpu


def _bayesian_nn_kernel(x_ref, w1_ref, b1_ref, w2_ref, b2_ref, out_ref):
    # fc1: (Bp, Dp)bf16 @ (Dp, Hp)bf16 -> f32 accum; bias add + ReLU in f32.
    h = jnp.dot(x_ref[...], w1_ref[...], preferred_element_type=jnp.float32)
    h = jnp.maximum(h + b1_ref[...], 0.0)
    # fc2: cast the activation to bf16 for the MXU, accumulate in f32.
    y = jnp.dot(h.astype(w2_ref.dtype), w2_ref[...],
                preferred_element_type=jnp.float32)
    out_ref[...] = (y + b2_ref[...]).astype(out_ref.dtype)


def _round_up(n, m):
    return ((n + m - 1) // m) * m


@functools.partial(jax.jit, static_argnames=())
def bayesian_nn_forward(x, w1, b1, w2, b2):
    """x: (B, D_in) f32; w1: (D_in, H); b1: (H,); w2: (H, O); b2: (O,).

    Returns (B, O) f32, matching fc2(relu(fc1(x))).
    """
    B, d_in = x.shape
    H = w1.shape[1]
    O = w2.shape[1]

    SUB, LANE = 8, 128
    Bp = _round_up(B, SUB)        # sublane-aligned batch
    Dp = _round_up(d_in, LANE)    # lane-dense contraction dim
    Hp = _round_up(H, LANE)       # 100 -> 128
    Op = _round_up(O, LANE)       # 4   -> 128

    # Zero-pad to dense shapes. Padded hidden units have zero weight and zero
    # bias (ReLU(0)=0 contributes nothing); padded batch rows / output columns
    # are sliced off below.
    x_p = jnp.pad(x, ((0, Bp - B), (0, Dp - d_in))).astype(jnp.bfloat16)
    w1_p = jnp.pad(w1, ((0, Dp - d_in), (0, Hp - H))).astype(jnp.bfloat16)
    b1_p = jnp.pad(b1, (0, Hp - H)).reshape(1, Hp).astype(jnp.float32)
    w2_p = jnp.pad(w2, ((0, Hp - H), (0, Op - O))).astype(jnp.bfloat16)
    b2_p = jnp.pad(b2, (0, Op - O)).reshape(1, Op).astype(jnp.float32)

    flops = 2 * Bp * (Dp * Hp + Hp * Op)
    bytes_accessed = (x_p.size * 2 + w1_p.size * 2 + w2_p.size * 2 +
                      b1_p.size * 4 + b2_p.size * 4 + Bp * Op * 4)

    vmem_spec = pl.BlockSpec(memory_space=pltpu.MemorySpace.VMEM)

    out_padded = pl.pallas_call(
        _bayesian_nn_kernel,
        out_shape=jax.ShapeDtypeStruct((Bp, Op), jnp.float32),
        in_specs=[vmem_spec] * 5,
        out_specs=vmem_spec,
        cost_estimate=pl.CostEstimate(
            flops=flops, transcendentals=0, bytes_accessed=bytes_accessed),
    )(x_p, w1_p, b1_p, w2_p, b2_p)

    # Strip sublane/lane padding outside the kernel.
    return out_padded[:B, :O]


if __name__ == "__main__":
    # Module hyperparameters (input_dim comes from the CSV in the original
    # script; pick a small deterministic stand-in).
    input_dim = 32
    hidden_dim = 100
    output_dim = 4
    batch = 8

    key = jax.random.PRNGKey(0)
    kx, kw1, kb1, kw2, kb2 = jax.random.split(key, 5)

    x = jax.random.normal(kx, (batch, input_dim), dtype=jnp.float32)

    # Deterministic "nn.Linear"-style init (uniform in +/- 1/sqrt(fan_in)),
    # stored already transposed to (in, out).
    lim1 = 1.0 / jnp.sqrt(jnp.float32(input_dim))
    w1 = jax.random.uniform(kw1, (input_dim, hidden_dim),
                            minval=-lim1, maxval=lim1, dtype=jnp.float32)
    b1 = jax.random.uniform(kb1, (hidden_dim,),
                            minval=-lim1, maxval=lim1, dtype=jnp.float32)

    lim2 = 1.0 / jnp.sqrt(jnp.float32(hidden_dim))
    w2 = jax.random.uniform(kw2, (hidden_dim, output_dim),
                            minval=-lim2, maxval=lim2, dtype=jnp.float32)
    b2 = jax.random.uniform(kb2, (output_dim,),
                            minval=-lim2, maxval=lim2, dtype=jnp.float32)

    out = bayesian_nn_forward(x, w1, b1, w2, b2)
    jax.block_until_ready(out)

    # Pure-JAX f32 reference of the forward semantics (tolerance loosened for
    # the bf16 MXU operands; accumulation is still f32).
    ref = jnp.maximum(x @ w1 + b1, 0.0) @ w2 + b2
    assert out.shape == (batch, output_dim)
    assert jnp.allclose(out, ref, atol=2e-2, rtol=2e-2), (
        float(jnp.max(jnp.abs(out - ref))))

    print("KERNEL_OK")
</pallas_src>

<mosaic_0001>
module attributes {stable_mosaic.version = 11 : i64} {
  func.func @_bayesian_nn_kernel(%arg0: memref<8x128xbf16, #tpu.memory_space<vmem>>, %arg1: memref<128x128xbf16, #tpu.memory_space<vmem>>, %arg2: memref<1x128xf32, #tpu.memory_space<vmem>>, %arg3: memref<128x128xbf16, #tpu.memory_space<vmem>>, %arg4: memref<1x128xf32, #tpu.memory_space<vmem>>, %arg5: memref<8x128xf32, #tpu.memory_space<vmem>>) attributes {dimension_semantics = [], scalar_prefetch = 0 : i64, scratch_operands = 0 : i64, tpu.core_type = #tpu.core_type<tc>} {
    %c0 = arith.constant 0 : index
    %c0_0 = arith.constant 0 : index
    %0 = vector.load %arg0[%c0, %c0_0] : memref<8x128xbf16, #tpu.memory_space<vmem>>, vector<8x128xbf16>
    %c0_1 = arith.constant 0 : index
    %c0_2 = arith.constant 0 : index
    %1 = vector.load %arg1[%c0_1, %c0_2] : memref<128x128xbf16, #tpu.memory_space<vmem>>, vector<128x128xbf16>
    %cst = arith.constant dense<0.000000e+00> : vector<8x128xf32>
    %2 = tpu.matmul %0, %1, %cst {dimension_numbers = #tpu.dot_dimension_numbers<[1], [0], [0], [1], [0, 0, 1, 1], [], []>} : vector<8x128xbf16>, vector<128x128xbf16>, vector<8x128xf32> -> vector<8x128xf32>
    %c0_3 = arith.constant 0 : index
    %c0_4 = arith.constant 0 : index
    %3 = vector.load %arg2[%c0_3, %c0_4] : memref<1x128xf32, #tpu.memory_space<vmem>>, vector<1x128xf32>
    %4 = vector.broadcast %3 : vector<1x128xf32> to vector<8x128xf32>
    %5 = arith.addf %2, %4 : vector<8x128xf32>
    %cst_5 = arith.constant 0.000000e+00 : f32
    %6 = vector.broadcast %cst_5 : f32 to vector<8x128xf32>
    %7 = arith.maximumf %5, %6 : vector<8x128xf32>
    %8 = arith.truncf %7 : vector<8x128xf32> to vector<8x128xbf16>
    %c0_6 = arith.constant 0 : index
    %c0_7 = arith.constant 0 : index
    %9 = vector.load %arg3[%c0_6, %c0_7] : memref<128x128xbf16, #tpu.memory_space<vmem>>, vector<128x128xbf16>
    %cst_8 = arith.constant dense<0.000000e+00> : vector<8x128xf32>
    %10 = tpu.matmul %8, %9, %cst_8 {dimension_numbers = #tpu.dot_dimension_numbers<[1], [0], [0], [1], [0, 0, 1, 1], [], []>} : vector<8x128xbf16>, vector<128x128xbf16>, vector<8x128xf32> -> vector<8x128xf32>
    %c0_9 = arith.constant 0 : index
    %c0_10 = arith.constant 0 : index
    %11 = vector.load %arg4[%c0_9, %c0_10] : memref<1x128xf32, #tpu.memory_space<vmem>>, vector<1x128xf32>
    %12 = vector.broadcast %11 : vector<1x128xf32> to vector<8x128xf32>
    %13 = arith.addf %10, %12 : vector<8x128xf32>
    %c0_11 = arith.constant 0 : index
    %c0_12 = arith.constant 0 : index
    %14 = vector.load %arg5[%c0_11, %c0_12] : memref<8x128xf32, #tpu.memory_space<vmem>>, vector<8x128xf32>
    tpu.vector_store %arg5[%c0_11, %c0_12], %13 {strides = array<i32>} : memref<8x128xf32, #tpu.memory_space<vmem>>, vector<8x128xf32>,
    return
  }
}

</mosaic_0001>

<bundles_post_ra>
// kernel: bayesian_nn_forward.1
= control target key start
LH: loop header
LB: loop body
LE: loop exit
PB: predicated region body
PF: predicated region fallthrough
CT: control target
= control target key end

     0   :  { %v345_v0 = vmov 0.0   ;;  %vm346_vm0 = vmmov 0   ;;  %s437_s1 = inlined_call_operand.vmem [shape: bf16[128,128], index: 1, kind: input, shape index: {}]   ;;  %s438_s3 = inlined_call_operand.vmem [shape: bf16[128,128], index: 3, kind: input, shape index: {}]   ;;  %s439_s0 = inlined_call_operand.vmem [shape: bf16[8,128], index: 0, kind: input, shape index: {}]   ;;  %s440_s2 = inlined_call_operand.vmem [shape: f32[1,128], index: 2, kind: input, shape index: {}]   ;;  %s441_s4 = inlined_call_operand.vmem [shape: f32[1,128], index: 4, kind: input, shape index: {}]   ;;  %s442_s5 = inlined_call_operand.vmem [shape: f32[8,128], index: 5, kind: output, shape index: {}]  }
   0x1   :  { %287 = vmatprep.subr.bf16.mxu0 %v345_v0  ;;  %v329_v1 = vld [vmem:[%s437_s1 + $0x38] sm:$0xff]   ;;  %303 = vmatprep.mubr.msk.bf16.mxu0 %vm346_vm0, %v345_v0  ;;  %v330_v2 = vld [vmem:[%s437_s1 + $0x30] sm:$0xff]   ;;  %v331_v3 = vld [vmem:[%s437_s1 + $0x28] sm:$0xff]  }
   0x2   :  { %307 = vmatprep.subr.bf16.mxu1 %v345_v0  ;;  %323 = vmatprep.mubr.msk.bf16.mxu1 %vm346_vm0, %v345_v0  ;;  %v337_v4 = vld [vmem:[%s438_s3 + $0x38] sm:$0xff]   ;;  %v332_v5 = vld [vmem:[%s437_s1 + $0x20] sm:$0xff]   ;;  %v338_v6 = vld [vmem:[%s438_s3 + $0x30] sm:$0xff]  }
   0x3   :  { %288 = vmatpush3.bf16.msra.mxu0 %v329_v1  ;;  %308 = vmatpush3.bf16.msra.mxu1 %v337_v4  ;;  %v333_v7 = vld [vmem:[%s437_s1 + $0x18] sm:$0xff]   ;;  %v339_v8 = vld [vmem:[%s438_s3 + $0x28] sm:$0xff]   ;;  %v334_v9 = vld [vmem:[%s437_s1 + $0x10] sm:$0xff]  }
   0x4   :  { %289 = vmatprep.subr.bf16.mxu0 %v345_v0  ;;  %309 = vmatprep.subr.bf16.mxu1 %v345_v0  ;;  %v340_v10 = vld [vmem:[%s438_s3 + $0x20] sm:$0xff]   ;;  %v335_v11 = vld [vmem:[%s437_s1 + $0x8] sm:$0xff]   ;;  %v341_v12 = vld [vmem:[%s438_s3 + $0x18] sm:$0xff]  }
   0x5   :  { %v336_v13 = vld [vmem:[%s437_s1] sm:$0xff]   ;;  %v342_v14 = vld [vmem:[%s438_s3 + $0x10] sm:$0xff]   ;;  %v343_v16 = vld [vmem:[%s438_s3 + $0x8] sm:$0xff]  }
   0x6   :  { %v21_v15 = vld [vmem:[%s439_s0] sm:$0xf] }
   0x7   :  { %290 = vmatpush3.bf16.msra.mxu0 %v330_v2  ;;  %310 = vmatpush3.bf16.msra.mxu1 %v338_v6  ;;  %v344_v17 = vld [vmem:[%s438_s3] sm:$0xff]  }
   0x8   :  { %291 = vmatprep.subr.bf16.mxu0 %v345_v0  ;;  %311 = vmatprep.subr.bf16.mxu1 %v345_v0  ;;  %v251_v18 = vld [vmem:[%s440_s2] ss:$0 sm:$0xff] }
   0x9   :  { %v260_v26 = vld [vmem:[%s441_s4] ss:$0 sm:$0xff] }
   0xb   :  { %292 = vmatpush3.bf16.msra.mxu0 %v331_v3  ;;  %312 = vmatpush3.bf16.msra.mxu1 %v339_v8 }
   0xc   :  { %293 = vmatprep.subr.bf16.mxu0 %v345_v0  ;;  %313 = vmatprep.subr.bf16.mxu1 %v345_v0 }
   0xf   :  { %294 = vmatpush3.bf16.msra.mxu0 %v332_v5  ;;  %314 = vmatpush3.bf16.msra.mxu1 %v340_v10 }
  0x10   :  { %295 = vmatprep.subr.bf16.mxu0 %v345_v0  ;;  %315 = vmatprep.subr.bf16.mxu1 %v345_v0 }
  0x13   :  { %296 = vmatpush3.bf16.msra.mxu0 %v333_v7  ;;  %316 = vmatpush3.bf16.msra.mxu1 %v341_v12 }
  0x14   :  { %297 = vmatprep.subr.bf16.mxu0 %v345_v0  ;;  %317 = vmatprep.subr.bf16.mxu1 %v345_v0 }
  0x17   :  { %298 = vmatpush3.bf16.msra.mxu0 %v334_v9  ;;  %318 = vmatpush3.bf16.msra.mxu1 %v342_v14 }
  0x18   :  { %299 = vmatprep.subr.bf16.mxu0 %v345_v0  ;;  %319 = vmatprep.subr.bf16.mxu1 %v345_v0 }
  0x1b   :  { %300 = vmatpush3.bf16.msra.mxu0 %v335_v11  ;;  %320 = vmatpush3.bf16.msra.mxu1 %v343_v16 }
  0x1c   :  { %301 = vmatprep.subr.bf16.mxu0 %v345_v0  ;;  %321 = vmatprep.subr.bf16.mxu1 %v345_v0 }
  0x1f   :  { %302 = vmatpush3.bf16.msra.mxu0 %v336_v13  ;;  %322 = vmatpush3.bf16.msra.mxu1 %v344_v17 }
  0x22   :  { %304 = vmatmul.mubr.bf16.vlgmr.msra.gmra.mxu0 %v21_v15 }
  0xe2   :  { %v127_v19 = vpop.f32.mrf.mxu0 }
  0xe3   :  { %v128_v20 = vadd.f32 %v251_v18, %v127_v19 }
  0xe4   :  { %v305_v21 = vpop.f32.mrf.mxu0 }
  0xe5   :  { %v133_v22 = vmax.f32 %v128_v20, 0.0 }
  0xe6   :  { %v130_v23 = vpop.f32.mrf.mxu0 }
  0xe7   :  { %v134_v24 = vpack.c.bf16 %v133_v22, %v133_v22 }
  0xe8   :  { %v306_v25 = vpop.f32.mrf.mxu0 }
  0xe9   :  { %324 = vmatmul.mubr.bf16.vlgmr.msra.gmra.mxu1 %v134_v24 }
 0x1a9   :  { %v240_v27 = vpop.f32.mrf.mxu1 }
 0x1aa   :  { %v241_v28 = vadd.f32 %v260_v26, %v240_v27 }
 0x1ab   :  { %v325_v29 = vpop.f32.mrf.mxu1 }
 0x1ac   :  { %246 = vst [vmem:[%s442_s5] sm:$0xff] %v241_v28 }
 0x1ad   :  { %v243_v30 = vpop.f32.mrf.mxu1 }
 0x1af   :  { %v326_v31 = vpop.f32.mrf.mxu1 }

</bundles_post_ra>
